<compile_context>
chip_gen: v6e
topology: v6e:2x2x1
jax: 0.10.0
libtpu: 0.0.40
codegen_flags: <defaults>
</compile_context>

<pallas_src>
import jax
import jax.numpy as jnp
from jax.experimental import pallas as pl
from jax.experimental.pallas import tpu as pltpu


def _round_up(x, m):
    return ((x + m - 1) // m) * m


def _corr2d_band_kernel(w_ref, b_ref, xm_ref, xh_ref, o_ref):
    # w_ref: (KH, KW) f32 in SMEM      b_ref: (1,) f32 in SMEM
    # xm_ref: (TH, Wp)   current input row band (VMEM)
    # xh_ref: (8,  Wp)   sublane halo = first 8 rows of the next band (VMEM)
    # o_ref:  (TH, OWp)  lane-dense padded output band (VMEM)
    kh, kw = w_ref.shape
    th, wp = xm_ref.shape
    _, owp = o_ref.shape

    # (TH + 8, Wp) working tile: band + halo rows below it.
    xt = jnp.concatenate([xm_ref[...], xh_ref[...]], axis=0)

    acc = jnp.zeros((th, owp), jnp.float32)
    for di in range(kh):
        # Row shift: sublane-offset slice (static, small, KH of them per tile).
        band = xt[di:di + th, :]
        for dj in range(kw):
            if dj == 0:
                win = band[:, :owp]
            else:
                # Lane shift on the XLU: roll left by dj (shift = Wp - dj >= 0),
                # then take the aligned leading OWp lanes.  Wrapped columns only
                # reach output columns >= OW, which the wrapper slices away.
                win = pltpu.roll(band, shift=wp - dj, axis=1)[:, :owp]
            acc = acc + w_ref[di, dj] * win
    # Bias broadcast kept in-kernel (single fused add in the epilogue).
    o_ref[...] = acc + b_ref[0]


def conv2d_forward(x, weight, bias, *, row_tile=256):
    """Equivalent of conv2D.forward: corr2d(x, weight) + bias."""
    H, W = x.shape
    KH, KW = weight.shape
    assert H >= KH and W >= KW
    OH, OW = H - KH + 1, W - KW + 1

    HALO = 8  # sublane-halo rows fetched from the next band
    # TODO(synk): support KH > 9 by widening the sublane halo band.
    assert KH - 1 <= HALO, "kernel height > 9 not supported by this tiling"

    # Lane-dense padded widths (multiples of 128).
    Wp = _round_up(W, 128)          # padded input width
    OWp = _round_up(OW, 128)        # padded output width (<= Wp)

    # Output rows per band: multiple of 8, capped by row_tile and a VMEM budget
    # sized for v7x's smaller (64 MiB physical / 32 MiB scoped) VMEM.
    TH = min(_round_up(OH, 8), _round_up(row_tile, 8))

    def _band_bytes(th):  # double-buffered f32 in/out traffic per band
        return 4 * 2 * ((th + HALO) * Wp + th * OWp)

    while TH > 8 and _band_bytes(TH) > 8 * 1024 * 1024:
        TH -= 8

    GH = -(-OH // TH)               # number of row bands
    Hp = GH * TH + HALO             # padded input rows (incl. trailing halo band)

    xp = jnp.zeros((Hp, Wp), jnp.float32).at[:H, :W].set(x.astype(jnp.float32))

    out_padded = pl.pallas_call(
        _corr2d_band_kernel,
        out_shape=jax.ShapeDtypeStruct((GH * TH, OWp), jnp.float32),
        grid=(GH,),
        in_specs=[
            pl.BlockSpec(memory_space=pltpu.SMEM),                 # weight (scalars)
            pl.BlockSpec(memory_space=pltpu.SMEM),                 # bias
            pl.BlockSpec((TH, Wp), lambda i: (i, 0)),              # current row band
            pl.BlockSpec((HALO, Wp),                                # 8-row halo from
                         lambda i: ((i + 1) * (TH // HALO), 0)),    # the next band
        ],
        out_specs=pl.BlockSpec((TH, OWp), lambda i: (i, 0)),
        compiler_params=pltpu.CompilerParams(
            dimension_semantics=("parallel",),     # megacore-shard bands on v7x
            vmem_limit_bytes=32 * 1024 * 1024,
        ),
    )(weight.astype(jnp.float32), bias.astype(jnp.float32), xp, xp)

    return out_padded[:OH, :OW]


def reference_conv2d(x, k, b):
    kh, kw = k.shape
    oh, ow = x.shape[0] - kh + 1, x.shape[1] - kw + 1
    out = jnp.zeros((oh, ow), jnp.float32)
    for di in range(kh):
        for dj in range(kw):
            out = out + k[di, dj] * x[di:di + oh, dj:dj + ow]
    return out + b[0]


if __name__ == "__main__":
    key = jax.random.PRNGKey(0)
    k_x, k_w, k_b, k_x2 = jax.random.split(key, 4)

    # Shapes consistent with the module: single-channel image, 3x3 learned kernel.
    H, W, KH, KW = 16, 16, 3, 3
    x = jax.random.normal(k_x, (H, W), dtype=jnp.float32)
    weight = jax.random.uniform(k_w, (KH, KW), dtype=jnp.float32)   # torch.rand analogue
    bias = jax.random.normal(k_b, (1,), dtype=jnp.float32)

    out = jax.block_until_ready(conv2d_forward(x, weight, bias))
    ref = reference_conv2d(x, weight, bias)
    assert out.shape == (H - KH + 1, W - KW + 1)
    assert jnp.allclose(out, ref, atol=1e-5, rtol=1e-5)

    # Second case: non-square image with a small row tile to exercise the
    # multi-band grid + sublane-halo path (GH > 1).
    H2, W2 = 40, 24
    x2 = jax.random.normal(k_x2, (H2, W2), dtype=jnp.float32)
    out2 = jax.block_until_ready(conv2d_forward(x2, weight, bias, row_tile=16))
    ref2 = reference_conv2d(x2, weight, bias)
    assert out2.shape == (H2 - KH + 1, W2 - KW + 1)
    assert jnp.allclose(out2, ref2, atol=1e-5, rtol=1e-5)

    print("KERNEL_OK")
</pallas_src>

<mosaic_0001>
module attributes {stable_mosaic.version = 11 : i64} {
  func.func @_corr2d_band_kernel(%arg0: i32, %arg1: memref<3x3xf32, #tpu.memory_space<smem>>, %arg2: memref<1xf32, #tpu.memory_space<smem>>, %arg3: memref<16x128xf32, #tpu.memory_space<vmem>>, %arg4: memref<8x128xf32, #tpu.memory_space<vmem>>, %arg5: memref<16x128xf32, #tpu.memory_space<vmem>>) attributes {dimension_semantics = [#tpu.dimension_semantics<parallel>], iteration_bounds = array<i64: 1>, scalar_prefetch = 0 : i64, scratch_operands = 0 : i64, tpu.core_type = #tpu.core_type<tc>, window_params = [{transform_indices = @transform_0, window_bounds = array<i64: 3, 3>}, {transform_indices = @transform_1, window_bounds = array<i64: 1>}, {transform_indices = @transform_2, window_bounds = array<i64: 16, 128>}, {transform_indices = @transform_3, window_bounds = array<i64: 8, 128>}, {transform_indices = @transform_4, window_bounds = array<i64: 16, 128>}]} {
    %c0 = arith.constant 0 : index
    %c0_0 = arith.constant 0 : index
    %0 = vector.load %arg3[%c0, %c0_0] : memref<16x128xf32, #tpu.memory_space<vmem>>, vector<16x128xf32>
    %c0_1 = arith.constant 0 : index
    %c0_2 = arith.constant 0 : index
    %1 = vector.load %arg4[%c0_1, %c0_2] : memref<8x128xf32, #tpu.memory_space<vmem>>, vector<8x128xf32>
    %2 = tpu.concatenate %0, %1 in 0 : vector<16x128xf32>, vector<8x128xf32> -> vector<24x128xf32>
    %cst = arith.constant 0.000000e+00 : f32
    %3 = vector.broadcast %cst : f32 to vector<16x128xf32>
    %4 = vector.extract_strided_slice %2 {offsets = [0, 0], sizes = [16, 128], strides = [1, 1]} : vector<24x128xf32> to vector<16x128xf32>
    %c0_3 = arith.constant 0 : index
    %c0_4 = arith.constant 0 : index
    %5 = memref.load %arg1[%c0_3, %c0_4] : memref<3x3xf32, #tpu.memory_space<smem>>
    %6 = vector.broadcast %5 : f32 to vector<16x128xf32>
    %7 = arith.mulf %6, %4 : vector<16x128xf32>
    %8 = arith.addf %3, %7 : vector<16x128xf32>
    %c127_i32 = arith.constant 127 : i32
    %9 = tpu.dynamic_rotate %4 by %c127_i32 dim 1 : vector<16x128xf32>, i32 -> vector<16x128xf32>
    %c0_5 = arith.constant 0 : index
    %c1 = arith.constant 1 : index
    %10 = memref.load %arg1[%c0_5, %c1] : memref<3x3xf32, #tpu.memory_space<smem>>
    %11 = vector.broadcast %10 : f32 to vector<16x128xf32>
    %12 = arith.mulf %11, %9 : vector<16x128xf32>
    %13 = arith.addf %8, %12 : vector<16x128xf32>
    %c126_i32 = arith.constant 126 : i32
    %14 = tpu.dynamic_rotate %4 by %c126_i32 dim 1 : vector<16x128xf32>, i32 -> vector<16x128xf32>
    %c0_6 = arith.constant 0 : index
    %c2 = arith.constant 2 : index
    %15 = memref.load %arg1[%c0_6, %c2] : memref<3x3xf32, #tpu.memory_space<smem>>
    %16 = vector.broadcast %15 : f32 to vector<16x128xf32>
    %17 = arith.mulf %16, %14 : vector<16x128xf32>
    %18 = arith.addf %13, %17 : vector<16x128xf32>
    %19 = vector.extract_strided_slice %2 {offsets = [1, 0], sizes = [16, 128], strides = [1, 1]} : vector<24x128xf32> to vector<16x128xf32>
    %c1_7 = arith.constant 1 : index
    %c0_8 = arith.constant 0 : index
    %20 = memref.load %arg1[%c1_7, %c0_8] : memref<3x3xf32, #tpu.memory_space<smem>>
    %21 = vector.broadcast %20 : f32 to vector<16x128xf32>
    %22 = arith.mulf %21, %19 : vector<16x128xf32>
    %23 = arith.addf %18, %22 : vector<16x128xf32>
    %c127_i32_9 = arith.constant 127 : i32
    %24 = tpu.dynamic_rotate %19 by %c127_i32_9 dim 1 : vector<16x128xf32>, i32 -> vector<16x128xf32>
    %c1_10 = arith.constant 1 : index
    %c1_11 = arith.constant 1 : index
    %25 = memref.load %arg1[%c1_10, %c1_11] : memref<3x3xf32, #tpu.memory_space<smem>>
    %26 = vector.broadcast %25 : f32 to vector<16x128xf32>
    %27 = arith.mulf %26, %24 : vector<16x128xf32>
    %28 = arith.addf %23, %27 : vector<16x128xf32>
    %c126_i32_12 = arith.constant 126 : i32
    %29 = tpu.dynamic_rotate %19 by %c126_i32_12 dim 1 : vector<16x128xf32>, i32 -> vector<16x128xf32>
    %c1_13 = arith.constant 1 : index
    %c2_14 = arith.constant 2 : index
    %30 = memref.load %arg1[%c1_13, %c2_14] : memref<3x3xf32, #tpu.memory_space<smem>>
    %31 = vector.broadcast %30 : f32 to vector<16x128xf32>
    %32 = arith.mulf %31, %29 : vector<16x128xf32>
    %33 = arith.addf %28, %32 : vector<16x128xf32>
    %34 = vector.extract_strided_slice %2 {offsets = [2, 0], sizes = [16, 128], strides = [1, 1]} : vector<24x128xf32> to vector<16x128xf32>
    %c2_15 = arith.constant 2 : index
    %c0_16 = arith.constant 0 : index
    %35 = memref.load %arg1[%c2_15, %c0_16] : memref<3x3xf32, #tpu.memory_space<smem>>
    %36 = vector.broadcast %35 : f32 to vector<16x128xf32>
    %37 = arith.mulf %36, %34 : vector<16x128xf32>
    %38 = arith.addf %33, %37 : vector<16x128xf32>
    %c127_i32_17 = arith.constant 127 : i32
    %39 = tpu.dynamic_rotate %34 by %c127_i32_17 dim 1 : vector<16x128xf32>, i32 -> vector<16x128xf32>
    %c2_18 = arith.constant 2 : index
    %c1_19 = arith.constant 1 : index
    %40 = memref.load %arg1[%c2_18, %c1_19] : memref<3x3xf32, #tpu.memory_space<smem>>
    %41 = vector.broadcast %40 : f32 to vector<16x128xf32>
    %42 = arith.mulf %41, %39 : vector<16x128xf32>
    %43 = arith.addf %38, %42 : vector<16x128xf32>
    %c126_i32_20 = arith.constant 126 : i32
    %44 = tpu.dynamic_rotate %34 by %c126_i32_20 dim 1 : vector<16x128xf32>, i32 -> vector<16x128xf32>
    %c2_21 = arith.constant 2 : index
    %c2_22 = arith.constant 2 : index
    %45 = memref.load %arg1[%c2_21, %c2_22] : memref<3x3xf32, #tpu.memory_space<smem>>
    %46 = vector.broadcast %45 : f32 to vector<16x128xf32>
    %47 = arith.mulf %46, %44 : vector<16x128xf32>
    %48 = arith.addf %43, %47 : vector<16x128xf32>
    %c0_23 = arith.constant 0 : index
    %49 = memref.load %arg2[%c0_23] : memref<1xf32, #tpu.memory_space<smem>>
    %50 = vector.broadcast %49 : f32 to vector<16x128xf32>
    %51 = arith.addf %48, %50 : vector<16x128xf32>
    %c0_24 = arith.constant 0 : index
    %c0_25 = arith.constant 0 : index
    %52 = vector.load %arg5[%c0_24, %c0_25] : memref<16x128xf32, #tpu.memory_space<vmem>>, vector<16x128xf32>
    tpu.vector_store %arg5[%c0_24, %c0_25], %51 {strides = array<i32>} : memref<16x128xf32, #tpu.memory_space<vmem>>, vector<16x128xf32>,
    return
  }
  func.func @transform_0(%arg0: i32) -> (i32, i32) {
    %c0_i32 = arith.constant 0 : i32
    %c0_i32_0 = arith.constant 0 : i32
    %c0_i32_1 = arith.constant 0 : i32
    return %c0_i32, %c0_i32_0 : i32, i32
  }
  func.func @transform_1(%arg0: i32) -> i32 {
    %c0_i32 = arith.constant 0 : i32
    %c0_i32_0 = arith.constant 0 : i32
    return %c0_i32 : i32
  }
  func.func @transform_2(%arg0: i32) -> (i32, i32) {
    %c0_i32 = arith.constant 0 : i32
    %c0_i32_0 = arith.constant 0 : i32
    return %arg0, %c0_i32 : i32, i32
  }
  func.func @transform_3(%arg0: i32) -> (i32, i32) {
    %c1_i32 = arith.constant 1 : i32
    %0 = arith.addi %arg0, %c1_i32 : i32
    %c2_i32 = arith.constant 2 : i32
    %1 = arith.muli %0, %c2_i32 : i32
    %c0_i32 = arith.constant 0 : i32
    %c0_i32_0 = arith.constant 0 : i32
    return %1, %c0_i32 : i32, i32
  }
  func.func @transform_4(%arg0: i32) -> (i32, i32) {
    %c0_i32 = arith.constant 0 : i32
    %c0_i32_0 = arith.constant 0 : i32
    return %arg0, %c0_i32 : i32, i32
  }
}

</mosaic_0001>

<bundles_post_ra>
// kernel: tpu_custom_call.1
= control target key start
LH: loop header
LB: loop body
LE: loop exit
PB: predicated region body
PF: predicated region fallthrough
CT: control target
= control target key end

     0   :  { %10 = vsyncpa [#allocation6], 0  ;;  %s379_s0 = inlined_call_operand.hbm [shape: f32[3,3], index: 0, kind: input, shape index: {}]   ;;  %s380_s1 = inlined_call_operand.<no memory space> [shape: f32[1], index: 1, kind: input, shape index: {}]   ;;  %s381_s2 = inlined_call_operand.hbm [shape: f32[24,128], index: 2, kind: input, shape index: {}]   ;;  %s382_s3 = inlined_call_operand.hbm [shape: f32[24,128], index: 3, kind: input, shape index: {}]   ;;  %s383_s4 = inlined_call_operand.hbm [shape: f32[16,128], index: 4, kind: output, shape index: {}]  }
   0x1   :  { %11 = vsyncpa [#allocation4], 0 }
   0x2   :  { %12 = vsyncpa [#allocation9], 0 }
   0x3   :  { %13 = vsyncpa [#allocation5], 0  ;;  %s305_s15 = smov [#allocation3]   ;;  %s306_s18 = smov [#allocation7]  }
   0x4   :  { %21 = dma.hbm_to_smem %s379_s0, 64, %s305_s15, [#allocation6]  }
   0x5   :  { %s29_s19 = sshll.u32 %s306_s18, 4  ;;  %s30_s19 = int_to_ptr.vmem [resolvable:$true] %s29_s19 }
   0x6   :  { %s242_s20 = scalar_lea.vmem %s30_s19, 256  ;;  %p247_p1 = scmp.lt.s32.totalorder %s30_s19, %s30_s19 }
   0x7   :  { %p243_p0 = scmp.ne.s32.totalorder %s30_s19, %s242_s20  ;;  %p248_p2 = scmp.lt.s32.totalorder %s242_s20, %s242_s20 }
   0x9   :  { %p249_p3 = por %p248_p2, %p247_p1 }
   0xb   :  { %p250_p4 = pnand %p249_p3, %p243_p0 }
   0xd   :  { %253 = shalt.err (!%p250_p4)
}
   0xe   :  { %s307_s21 = smov 128   ;;  %s308_s22 = smov 8  }
   0xf   :  { %35 = dma.hbm_to_vmem [thread:$0]  %s381_s2, 256, %s30_s19, [#allocation4], %s307_s21, %s307_s21, %s308_s22  }
  0x10   :  { %s209_s26 = scalar_lea.hbm %s382_s3, 256  ;;  %s309_s27 = smov [#allocation8]  }
  0x11   :  { %s46_s28 = sshll.u32 %s309_s27, 4  ;;  %s47_s28 = int_to_ptr.vmem [resolvable:$true] %s46_s28 }
  0x12   :  { %s264_s29 = scalar_lea.vmem %s47_s28, 128  ;;  %p269_p6 = scmp.lt.s32.totalorder %s47_s28, %s47_s28 }
  0x13   :  { %p265_p5 = scmp.ne.s32.totalorder %s47_s28, %s264_s29  ;;  %p270_p7 = scmp.lt.s32.totalorder %s264_s29, %s264_s29 }
  0x15   :  { %p271_p8 = por %p270_p7, %p269_p6 }
  0x17   :  { %p272_p9 = pnand %p271_p8, %p265_p5 }
  0x19   :  { %275 = shalt.err (!%p272_p9)
}
  0x1a   :  { %49 = dma.hbm_to_vmem [thread:$0]  %s209_s26, 128, %s47_s28, [#allocation9]  }
  0x1b   :  { %297 = dma.done.wait [#allocation6], 64  }
  0x1c   :  { %298 = vsyncadd [#allocation6], 4294967232 }
  0x1d   :  { %299 = dma.done.wait [#allocation4], 256  }
  0x1e   :  { %300 = vsyncadd [#allocation4], 4294967040 }
  0x1f   :  { %301 = dma.done.wait [#allocation9], 128  }
  0x20   :  { %302 = vsyncadd [#allocation9], 4294967168 }
  0x21   :  { %59 = sfence }
  0x22   :  { %v62_v0 = vld [vmem:[#allocation7] sm:$0xff]  ;;  %v63_v1 = vld [vmem:[#allocation7 + $0x8] sm:$0xff]  ;;  %v64_v2 = vld [vmem:[#allocation8] sm:$0xff]  ;;  %s310_s2 = smov 126   ;;  %s311_s3 = smov 127   ;;  %vm99_vm0 = vcmask 1046528  }
  0x23   :  { %81 = vrot.lane.b32.xlu1 %v62_v0, %s310_s2  ;;  %71 = vrot.lane.b32.xlu0 %v62_v0, %s311_s3  ;;  %v113_v3 = vrot.slane %v63_v1, 1  ;;  %v115_v4 = vrot.slane %v64_v2, 1  ;;  %v112_v5 = vrot.slane %v62_v0, 1  ;;  %s212_s30 = sld [smem:[#allocation3 + $0x80]]  ;;  %v158_v8 = vrot.slane %v63_v1, 2  ;;  %s312_s15 = smov [#allocation10]  }
  0x24   :  { %s215_s5 = sld [smem:[#allocation3 + $0x100]]  ;;  %v160_v9 = vrot.slane %v64_v2, 2  ;;  %vm147_vm1 = vcmask 1045504   ;;  %v157_v10 = vrot.slane %v62_v0, 2  ;;  %s195_s16 = sshll.u32 %s312_s15, 4  ;;  %s196_s16 = int_to_ptr.vmem [resolvable:$true] %s195_s16 }
  0x25   :  { %v116_v6 = vsel %vm99_vm0, %v113_v3, %v115_v4  ;;  %v114_v7 = vsel %vm99_vm0, %v112_v5, %v113_v3  ;;  %s65_s6 = sld [smem:[#allocation3]]  ;;  %s277_s17 = scalar_lea.vmem %s196_s16, 256 }
  0x26   :  { %v161_v15 = vsel %vm147_vm1, %v158_v8, %v160_v9  ;;  %v159_v20 = vsel %vm147_vm1, %v157_v10, %v158_v8  ;;  %s210_s7 = sld [smem:[#allocation3 + $0x1]]  ;;  %p278_p10 = scmp.ne.s32.totalorder %s196_s16, %s277_s17 }
  0x27   :  { %83 = vrot.lane.b32.xlu1 %v63_v1, %s310_s2  ;;  %73 = vrot.lane.b32.xlu0 %v63_v1, %s311_s3  ;;  %s211_s8 = sld [smem:[#allocation3 + $0x2]]  ;;  %p282_p11 = scmp.lt.s32.totalorder %s196_s16, %s196_s16 }
  0x28   :  { %s213_s9 = sld [smem:[#allocation3 + $0x81]]  ;;  %p283_p12 = scmp.lt.s32.totalorder %s277_s17, %s277_s17 }
  0x29   :  { %v92_v11 = vstv %s212_s30  ;;  %s214_s10 = sld [smem:[#allocation3 + $0x82]] }
  0x2a   :  { %v94_v12 = vmul.f32 %v92_v11, %v63_v1  ;;  %v95_v13 = vmul.f32 %v92_v11, %v64_v2  ;;  %v93_v14 = vmul.f32 %v92_v11, %v62_v0  ;;  %v140_v19 = vstv %s215_s5  ;;  %s216_s11 = sld [smem:[#allocation3 + $0x101]]  ;;  %p284_p13 = por %p283_p12, %p282_p11 }
  0x2b   :  { %121 = vrot.lane.b32.xlu1 %v116_v6, %s311_s3  ;;  %119 = vrot.lane.b32.xlu0 %v114_v7, %s311_s3  ;;  %v142_v21 = vmul.f32 %v140_v19, %v63_v1  ;;  %v143_v22 = vmul.f32 %v140_v19, %v64_v2  ;;  %v141_v23 = vmul.f32 %v140_v19, %v62_v0  ;;  %v66_v31 = vstv %s65_s6  ;;  %s217_s12 = sld [smem:[#allocation3 + $0x102]] }
  0x2c   :  { %v101_v16 = vrot.slane %v94_v12, 1  ;;  %v103_v17 = vrot.slane %v95_v13, 1  ;;  %v100_v18 = vrot.slane %v93_v14, 1  ;;  %v76_v32 = vstv %s210_s7  ;;  %p285_p0 = pnand %p284_p13, %p278_p10 }
  0x2d   :  { %v149_v26 = vrot.slane %v142_v21, 2  ;;  %v151_v27 = vrot.slane %v143_v22, 2  ;;  %v148_v28 = vrot.slane %v141_v23, 2  ;;  %v67_v33 = vmul.f32 %v66_v31, %v62_v0 }
  0x2e   :  { %v104_v24 = vsel %vm99_vm0, %v101_v16, %v103_v17  ;;  %v102_v25 = vsel %vm99_vm0, %v100_v18, %v101_v16  ;;  %v86_v34 = vstv %s211_s8  ;;  %v68_v40 = vmul.f32 %v66_v31, %v63_v1 }
  0x2f   :  { %131 = vrot.lane.b32.xlu1 %v116_v6, %s310_s2  ;;  %129 = vrot.lane.b32.xlu0 %v114_v7, %s310_s2  ;;  %v152_v29 = vsel %vm147_vm1, %v149_v26, %v151_v27  ;;  %v150_v30 = vsel %vm147_vm1, %v148_v28, %v149_v26  ;;  %v124_v45 = vstv %s213_s9  ;;  %v134_v53 = vstv %s214_s10 }
  0x30   :  { %v169_v62 = vstv %s216_s11  ;;  %v185_v14 = vstv %s380_s1 }
  0x31   :  { %v179_v7 = vstv %s217_s12 }
  0x33   :  { %166 = vrot.lane.b32.xlu1 %v161_v15, %s311_s3  ;;  %164 = vrot.lane.b32.xlu0 %v159_v20, %s311_s3 }
  0x37   :  { %176 = vrot.lane.b32.xlu1 %v161_v15, %s310_s2  ;;  %174 = vrot.lane.b32.xlu0 %v159_v20, %s310_s2 }
  0x95   :  { %v82_v35 = vpop.permute.xlu1 %81  ;;  %v72_v36 = vpop.permute.xlu0 %71 }
  0x96   :  { %v77_v37 = vmul.f32 %v76_v32, %v72_v36  ;;  %v87_v38 = vmul.f32 %v86_v34, %v82_v35 }
  0x98   :  { %v79_v39 = vadd.f32 %v77_v37, %v67_v33 }
  0x99   :  { %v84_v41 = vpop.permute.xlu1 %83  ;;  %v74_v42 = vpop.permute.xlu0 %73 }
  0x9a   :  { %v89_v43 = vadd.f32 %v87_v38, %v79_v39  ;;  %v78_v44 = vmul.f32 %v76_v32, %v74_v42  ;;  %v88_v46 = vmul.f32 %v86_v34, %v84_v41 }
  0x9c   :  { %v80_v47 = vadd.f32 %v78_v44, %v68_v40  ;;  %v107_v48 = vadd.f32 %v102_v25, %v89_v43 }
  0x9d   :  { %v122_v49 = vpop.permute.xlu1 %121  ;;  %v120_v50 = vpop.permute.xlu0 %119 }
  0x9e   :  { %v90_v51 = vadd.f32 %v88_v46, %v80_v47  ;;  %v125_v52 = vmul.f32 %v124_v45, %v120_v50  ;;  %v126_v55 = vmul.f32 %v124_v45, %v122_v49 }
  0xa0   :  { %v108_v54 = vadd.f32 %v104_v24, %v90_v51  ;;  %v127_v59 = vadd.f32 %v125_v52, %v107_v48 }
  0xa1   :  { %v132_v56 = vpop.permute.xlu1 %131  ;;  %v130_v57 = vpop.permute.xlu0 %129 }
  0xa2   :  { %v128_v58 = vadd.f32 %v126_v55, %v108_v54  ;;  %v136_v60 = vmul.f32 %v134_v53, %v132_v56  ;;  %v135_v61 = vmul.f32 %v134_v53, %v130_v57 }
  0xa4   :  { %v138_v63 = vadd.f32 %v136_v60, %v128_v58  ;;  %v137_v0 = vadd.f32 %v135_v61, %v127_v59 }
  0xa5   :  { %v167_v1 = vpop.permute.xlu1 %166  ;;  %v165_v2 = vpop.permute.xlu0 %164 }
  0xa6   :  { %v156_v3 = vadd.f32 %v152_v29, %v138_v63  ;;  %v171_v4 = vmul.f32 %v169_v62, %v167_v1  ;;  %v155_v5 = vadd.f32 %v150_v30, %v137_v0  ;;  %v170_v6 = vmul.f32 %v169_v62, %v165_v2 }
  0xa8   :  { %v173_v10 = vadd.f32 %v171_v4, %v156_v3  ;;  %v172_v11 = vadd.f32 %v170_v6, %v155_v5 }
  0xa9   :  { %v177_v8 = vpop.permute.xlu1 %176  ;;  %v175_v9 = vpop.permute.xlu0 %174 }
  0xaa   :  { %v181_v12 = vmul.f32 %v179_v7, %v177_v8  ;;  %v180_v13 = vmul.f32 %v179_v7, %v175_v9 }
  0xac   :  { %v183_v15 = vadd.f32 %v181_v12, %v173_v10  ;;  %v182_v16 = vadd.f32 %v180_v13, %v172_v11 }
  0xae   :  { %v186_v17 = vadd.f32 %v185_v14, %v182_v16  ;;  %v187_v18 = vadd.f32 %v185_v14, %v183_v15 }
  0xb0   :  { %188 = vst [vmem:[#allocation10] sm:$0xff] %v186_v17  ;;  %189 = vst [vmem:[#allocation10 + $0x8] sm:$0xff] %v187_v18 }
  0xb1   :  { %288 = shalt.err (!%p285_p0)
}
  0xb2   :  { %201 = dma.vmem_to_hbm [thread:$0]  %s196_s16, 256, %s383_s4, [#allocation5], %s307_s21, %s307_s21, %s308_s22  }
  0xb3   :  { %303 = dma.done.wait [#allocation5], 256  }
  0xb4   :  { %304 = vsyncadd [#allocation5], 4294967040 }
  0xb5   :  { %205 = vsyncpa [#allocation4], 1 }
  0xb6   :  { %206 = vsyncpa [#allocation9], 1 }
  0xb7   :  { %207 = vsyncpa [#allocation5], 1 }
  0xb8   :  { %208 = vsyncpa [#allocation6], 1 }

</bundles_post_ra>
